<compile_context>
chip_gen: v7x
topology: tpu7x:2x2x1
jax: 0.10.0
libtpu: 0.0.40
codegen_flags: <defaults>
</compile_context>

<pallas_src>
import functools

import jax
import jax.numpy as jnp
from jax.experimental import pallas as pl
from jax.experimental.pallas import tpu as pltpu
from jax.scipy.special import logsumexp


def _milnce_row_tile_kernel(v_ref, t_ref, den1_ref, nom_ref, col_ref, *, caps_per_video):
    """Statistics for one row tile of the (B, N) similarity matrix."""
    i = pl.program_id(0)
    tm = v_ref.shape[0]
    n = t_ref.shape[0]
    c = caps_per_video

    # MXU: (TM, D) @ (N, D)^T without materializing a transposed text matrix.
    x = jax.lax.dot_general(
        v_ref[...], t_ref[...],
        dimension_numbers=(((1,), (1,)), ((), ())),
        preferred_element_type=jnp.float32,
    )  # (TM, N), f32

    # ---- the one full-tile exp pass, shared by all three statistics.
    m_row = jnp.max(x, axis=1, keepdims=True)                         # (TM, 1)
    e = jnp.exp(x - m_row)                                            # (TM, N)  EUP

    # den1: full-row logsumexp.
    den1_ref[...] = m_row + jnp.log(jnp.sum(e, axis=1, keepdims=True))

    # nom: diagonal caption block. Global row g = i*TM + r owns columns [g*C, g*C+C).
    col = jax.lax.broadcasted_iota(jnp.int32, (tm, n), 1)             # (TM, N)
    start = (i * tm + jax.lax.broadcasted_iota(jnp.int32, (tm, 1), 0)) * c
    mask = (col >= start) & (col < start + c)
    # Reuses m_row (full-row max): exact unless the diagonal block sits ~88+ below the
    # row max (impossible for similarity logits).
    nom_ref[...] = m_row + jnp.log(
        jnp.sum(jnp.where(mask, e, 0.0), axis=1, keepdims=True))

    # Column partials reuse e: exp(x - m_tile) = e * exp(m_row - m_tile).
    # One (TM,1) exp + one (TM,N) VPU multiply replaces a second full-tile EUP pass.
    m_tile = jnp.max(m_row, axis=0, keepdims=True)                    # (1, 1)
    row_scale = jnp.exp(m_row - m_tile)                               # (TM, 1)
    s_col = jnp.sum(e * row_scale, axis=0, keepdims=True)             # (1, N)
    col_ref[0] = m_tile + jnp.log(s_col)                              # (1, N)


def _pick_block_rows(batch):
    for cand in (256, 128, 64, 32, 16, 8):
        if batch % cand == 0:
            return cand
    return batch  # small / ragged batch: single full-array tile (always a legal block)


def milnce_loss(video_embd, text_embd, *, block_rows=None):
    """MIL-NCE loss. video_embd: (B, D); text_embd: (N, D) with N % B == 0. Returns f32 scalar."""
    b, d = video_embd.shape
    n, d2 = text_embd.shape
    assert d == d2, f"embedding dims differ: {d} vs {d2}"
    assert n % b == 0, f"text rows ({n}) must be a multiple of the video batch ({b})"
    c = n // b

    if block_rows is None:
        block_rows = _pick_block_rows(b)
    if b % block_rows != 0 or (block_rows % 8 != 0 and block_rows != b):
        block_rows = b  # fall back to a single tile (block == full array is always legal)
    tm = block_rows
    g = b // tm

    kernel = functools.partial(_milnce_row_tile_kernel, caps_per_video=c)
    den1, nom, col_part = pl.pallas_call(
        kernel,
        grid=(g,),
        in_specs=[
            pl.BlockSpec((tm, d), lambda i: (i, 0)),   # video row tile
            pl.BlockSpec((n, d), lambda i: (0, 0)),    # full text, stays VMEM-resident
        ],
        out_specs=(
            pl.BlockSpec((tm, 1), lambda i: (i, 0)),
            pl.BlockSpec((tm, 1), lambda i: (i, 0)),
            pl.BlockSpec((1, 1, n), lambda i: (i, 0, 0)),
        ),
        out_shape=(
            jax.ShapeDtypeStruct((b, 1), jnp.float32),     # den1: full-row lse
            jax.ShapeDtypeStruct((b, 1), jnp.float32),     # nom: diagonal-block lse
            jax.ShapeDtypeStruct((g, 1, n), jnp.float32),  # per-tile per-column lse
        ),
        compiler_params=pltpu.CompilerParams(
            dimension_semantics=("parallel",)),
    )(video_embd, text_embd)

    # Tiny epilogue on (B,) / (G, N)-sized arrays.
    den1 = den1[:, 0]
    nom = nom[:, 0]
    col_lse = logsumexp(col_part[:, 0, :], axis=0)          # (N,)  combine row tiles
    den2 = logsumexp(col_lse.reshape(b, c), axis=1)         # (B,)  caption-group lse
    den = jnp.logaddexp(den1, den2)
    return jnp.mean(den - nom)


def milnce_loss_ref(video_embd, text_embd):
    """Pure-JAX reference mirroring the PyTorch code line by line."""
    b = video_embd.shape[0]
    x = jnp.matmul(video_embd, text_embd.T)
    x = x.reshape(b, b, -1)
    nominator = x * jnp.eye(b)[:, :, None]
    nominator = nominator.sum(axis=1)
    nominator = logsumexp(nominator, axis=1)
    denominator = jnp.concatenate((x, jnp.transpose(x, (1, 0, 2))), axis=1).reshape(b, -1)
    denominator = logsumexp(denominator, axis=1)
    return jnp.mean(denominator - nominator)


if __name__ == "__main__":
    B, C, D = 16, 4, 32       # 16 videos, 4 candidate captions each, 32-dim embeddings
    key = jax.random.PRNGKey(0)
    kv, kt = jax.random.split(key)
    video_embd = jax.random.normal(kv, (B, D), dtype=jnp.float32)
    text_embd = jax.random.normal(kt, (B * C, D), dtype=jnp.float32)

    ref = jax.block_until_ready(milnce_loss_ref(video_embd, text_embd))

    # Multi-tile path: grid of 2 row tiles on the "parallel" axis.
    loss_tiled = jax.block_until_ready(milnce_loss(video_embd, text_embd, block_rows=8))
    # Auto tile size (single full-batch tile at this batch size).
    loss_auto = jax.block_until_ready(milnce_loss(video_embd, text_embd))

    assert jnp.allclose(loss_tiled, ref, rtol=1e-5, atol=1e-5), (loss_tiled, ref)
    assert jnp.allclose(loss_auto, ref, rtol=1e-5, atol=1e-5), (loss_auto, ref)
    print("KERNEL_OK")
</pallas_src>

<mosaic_0001>
module attributes {stable_mosaic.version = 11 : i64} {
  func.func @_milnce_row_tile_kernel(%arg0: i32, %arg1: memref<8x32xf32, #tpu.memory_space<vmem>>, %arg2: memref<64x32xf32, #tpu.memory_space<vmem>>, %arg3: memref<8x1xf32, #tpu.memory_space<vmem>>, %arg4: memref<8x1xf32, #tpu.memory_space<vmem>>, %arg5: memref<1x1x64xf32, #tpu.memory_space<vmem>>) attributes {dimension_semantics = [#tpu.dimension_semantics<parallel>], iteration_bounds = array<i64: 2>, scalar_prefetch = 0 : i64, scratch_operands = 0 : i64, tpu.core_type = #tpu.core_type<tc>, window_params = [{transform_indices = @transform_0, window_bounds = array<i64: 8, 32>}, {pipeline_mode = #tpu.pipeline_mode<synchronous>, transform_indices = @transform_1, window_bounds = array<i64: 64, 32>}, {transform_indices = @transform_2, window_bounds = array<i64: 8, 1>}, {transform_indices = @transform_3, window_bounds = array<i64: 8, 1>}, {transform_indices = @transform_4, window_bounds = array<i64: 1, 1, 64>}]} {
    %c0 = arith.constant 0 : index
    %c0_0 = arith.constant 0 : index
    %0 = vector.load %arg1[%c0, %c0_0] : memref<8x32xf32, #tpu.memory_space<vmem>>, vector<8x32xf32>
    %c0_1 = arith.constant 0 : index
    %c0_2 = arith.constant 0 : index
    %1 = vector.load %arg2[%c0_1, %c0_2] : memref<64x32xf32, #tpu.memory_space<vmem>>, vector<64x32xf32>
    %cst = arith.constant dense<0.000000e+00> : vector<8x64xf32>
    %2 = tpu.matmul %0, %1, %cst {dimension_numbers = #tpu.dot_dimension_numbers<[1], [1], [0], [0], [0, 0, 1, 0], [], []>} : vector<8x32xf32>, vector<64x32xf32>, vector<8x64xf32> -> vector<8x64xf32>
    %cst_3 = arith.constant dense<0xFF800000> : vector<8xf32>
    %3 = vector.multi_reduction <maximumf>, %2, %cst_3 [1] : vector<8x64xf32> to vector<8xf32>
    %4 = vector.shape_cast %3 : vector<8xf32> to vector<8x1xf32>
    %5 = vector.broadcast %4 : vector<8x1xf32> to vector<8x64xf32>
    %6 = arith.subf %2, %5 : vector<8x64xf32>
    %7 = math.exp %6 : vector<8x64xf32>
    %cst_4 = arith.constant dense<0.000000e+00> : vector<8xf32>
    %8 = vector.multi_reduction <add>, %7, %cst_4 [1] : vector<8x64xf32> to vector<8xf32>
    %9 = vector.shape_cast %8 : vector<8xf32> to vector<8x1xf32>
    %10 = math.log %9 : vector<8x1xf32>
    %11 = arith.addf %4, %10 : vector<8x1xf32>
    %c0_5 = arith.constant 0 : index
    %c0_6 = arith.constant 0 : index
    %12 = vector.load %arg3[%c0_5, %c0_6] : memref<8x1xf32, #tpu.memory_space<vmem>>, vector<8x1xf32>
    tpu.vector_store %arg3[%c0_5, %c0_6], %11 {strides = array<i32>} : memref<8x1xf32, #tpu.memory_space<vmem>>, vector<8x1xf32>,
    %13 = tpu.iota {dimensions = array<i32: 1>} : vector<8x64xi32>
    %c8_i32 = arith.constant 8 : i32
    %14 = arith.muli %arg0, %c8_i32 : i32
    %15 = tpu.iota {dimensions = array<i32: 0>} : vector<8x1xi32>
    %16 = vector.broadcast %14 : i32 to vector<8x1xi32>
    %17 = arith.addi %16, %15 : vector<8x1xi32>
    %c4_i32 = arith.constant 4 : i32
    %18 = vector.broadcast %c4_i32 : i32 to vector<8x1xi32>
    %19 = arith.muli %17, %18 : vector<8x1xi32>
    %20 = vector.broadcast %19 : vector<8x1xi32> to vector<8x64xi32>
    %21 = arith.cmpi sge, %13, %20 : vector<8x64xi32>
    %c4_i32_7 = arith.constant 4 : i32
    %22 = vector.broadcast %c4_i32_7 : i32 to vector<8x1xi32>
    %23 = arith.addi %19, %22 : vector<8x1xi32>
    %24 = vector.broadcast %23 : vector<8x1xi32> to vector<8x64xi32>
    %25 = arith.cmpi slt, %13, %24 : vector<8x64xi32>
    %26 = arith.andi %21, %25 : vector<8x64xi1>
    %cst_8 = arith.constant 0.000000e+00 : f32
    %27 = vector.broadcast %cst_8 : f32 to vector<8x64xf32>
    %28 = arith.select %26, %7, %27 : vector<8x64xi1>, vector<8x64xf32>
    %cst_9 = arith.constant dense<0.000000e+00> : vector<8xf32>
    %29 = vector.multi_reduction <add>, %28, %cst_9 [1] : vector<8x64xf32> to vector<8xf32>
    %30 = vector.shape_cast %29 : vector<8xf32> to vector<8x1xf32>
    %31 = math.log %30 : vector<8x1xf32>
    %32 = arith.addf %4, %31 : vector<8x1xf32>
    %c0_10 = arith.constant 0 : index
    %c0_11 = arith.constant 0 : index
    %33 = vector.load %arg4[%c0_10, %c0_11] : memref<8x1xf32, #tpu.memory_space<vmem>>, vector<8x1xf32>
    tpu.vector_store %arg4[%c0_10, %c0_11], %32 {strides = array<i32>} : memref<8x1xf32, #tpu.memory_space<vmem>>, vector<8x1xf32>,
    %cst_12 = arith.constant dense<0xFF800000> : vector<1xf32>
    %34 = vector.multi_reduction <maximumf>, %4, %cst_12 [0] : vector<8x1xf32> to vector<1xf32>
    %35 = vector.shape_cast %34 : vector<1xf32> to vector<1x1xf32>
    %36 = vector.broadcast %35 : vector<1x1xf32> to vector<8x1xf32>
    %37 = arith.subf %4, %36 : vector<8x1xf32>
    %38 = math.exp %37 : vector<8x1xf32>
    %39 = vector.broadcast %38 : vector<8x1xf32> to vector<8x64xf32>
    %40 = arith.mulf %7, %39 : vector<8x64xf32>
    %cst_13 = arith.constant dense<0.000000e+00> : vector<64xf32>
    %41 = vector.multi_reduction <add>, %40, %cst_13 [0] : vector<8x64xf32> to vector<64xf32>
    %42 = vector.shape_cast %41 : vector<64xf32> to vector<1x64xf32>
    %43 = math.log %42 : vector<1x64xf32>
    %44 = vector.broadcast %35 : vector<1x1xf32> to vector<1x64xf32>
    %45 = arith.addf %44, %43 : vector<1x64xf32>
    %c0_14 = arith.constant 0 : index
    %c0_15 = arith.constant 0 : index
    %c0_16 = arith.constant 0 : index
    %46 = vector.load %arg5[%c0_14, %c0_15, %c0_16] : memref<1x1x64xf32, #tpu.memory_space<vmem>>, vector<1x1x64xf32>
    %47 = vector.shape_cast %46 : vector<1x1x64xf32> to vector<1x64xf32>
    %48 = vector.shape_cast %45 : vector<1x64xf32> to vector<1x1x64xf32>
    tpu.vector_store %arg5[%c0_14, %c0_15, %c0_16], %48 {strides = array<i32>} : memref<1x1x64xf32, #tpu.memory_space<vmem>>, vector<1x1x64xf32>,
    return
  }
  func.func @transform_0(%arg0: i32) -> (i32, i32) {
    %c0_i32 = arith.constant 0 : i32
    %c0_i32_0 = arith.constant 0 : i32
    return %arg0, %c0_i32 : i32, i32
  }
  func.func @transform_1(%arg0: i32) -> (i32, i32) {
    %c0_i32 = arith.constant 0 : i32
    %c0_i32_0 = arith.constant 0 : i32
    %c0_i32_1 = arith.constant 0 : i32
    return %c0_i32, %c0_i32_0 : i32, i32
  }
  func.func @transform_2(%arg0: i32) -> (i32, i32) {
    %c0_i32 = arith.constant 0 : i32
    %c0_i32_0 = arith.constant 0 : i32
    return %arg0, %c0_i32 : i32, i32
  }
  func.func @transform_3(%arg0: i32) -> (i32, i32) {
    %c0_i32 = arith.constant 0 : i32
    %c0_i32_0 = arith.constant 0 : i32
    return %arg0, %c0_i32 : i32, i32
  }
  func.func @transform_4(%arg0: i32) -> (i32, i32, i32) {
    %c0_i32 = arith.constant 0 : i32
    %c0_i32_0 = arith.constant 0 : i32
    %c0_i32_1 = arith.constant 0 : i32
    return %arg0, %c0_i32, %c0_i32_0 : i32, i32, i32
  }
}

</mosaic_0001>

<bundles_post_ra>
// kernel: tpu_custom_call.1
= control target key start
LH: loop header
LB: loop body
LE: loop exit
PB: predicated region body
PF: predicated region fallthrough
CT: control target
= control target key end

     0   :  { %10 = vsyncpa [#allocation3], 0  ;;  %s879_s0 = inlined_call_operand.vmem [shape: f32[16,32], index: 0, kind: input, shape index: {}]   ;;  %s880_s1 = inlined_call_operand.vmem [shape: f32[64,32], index: 1, kind: input, shape index: {}]   ;;  %s881_s2 = inlined_call_operand.vmem [shape: f32[16,1], index: 2, kind: output, shape index: {0}]   ;;  %s882_s3 = inlined_call_operand.vmem [shape: f32[16,1], index: 3, kind: output, shape index: {1}]   ;;  %s883_s4 = inlined_call_operand.hbm [shape: f32[2,1,64], index: 4, kind: output, shape index: {2}]  }
   0x1   :  { %12 = vsyncpa [#allocation3 + $0x1], 0  ;;  %s716_s15 = smov 0   ;;  %s718_s16 = smov 0  }
   0x2   :  { %s720_s17 = smov 0   ;;  %s722_s18 = smov 0  }
   0x3 LB: > { %s737_s19 = sadd.s32 4294967295, %s685_s18   ;;  %s507_s20 = sadd.s32 4294967294, %s685_s18   ;;  %s685_s18 = sphi %s722_s18, %s891_s18   ;;  %s681_s17 = sphi %s720_s17, %s890_s17   ;;  %s677_s16 = sphi %s718_s16, %s889_s16   ;;  %s673_s15 = sphi %s716_s15, %s888_s15  }
   0x4   : > { %s741_s21 = sadd.s32 1, %s685_s18   ;;  %s124_s22 = sadd.s32 1, %s681_s17 }
   0x5   : > { %s121_s23 = ssub.s32 %s685_s18, %s741_s21  ;;  %p134_p0 = scmp.ne.s32.totalorder %s681_s17, %s677_s16 }
   0x6   : > { %p122_p1 = scmp.eq.s32.totalorder %s121_s23, 0  ;;  %p135_p2 = scmp.eq.s32.totalorder %s737_s19, 1 }
   0x7   : > { %p140_p3 = scmp.ne.s32.totalorder %s677_s16, %s673_s15  ;;  %p141_p4 = scmp.eq.s32.totalorder %s507_s20, 1 }
   0x8   : > { %s752_s24 = scalar_select %p122_p1, %s681_s17, %s124_s22  }
   0x9   : > { %p754_p5 = por %p135_p2, %p134_p0  ;;  %p758_p6 = por %p141_p4, %p140_p3 }
   0xa   : > { %p510_p7 = scmp.ge.s32.totalorder %s685_s18, 1  ;;  %p169_p8 = scmp.lt.s32.totalorder %s685_s18, 3 }
   0xc   : > { %p170_p9 = pnand %p510_p7, %p169_p8 }
   0xd   : > { %v214_v0 = vld [vmem:[%s880_s1] sm:$0xff] (!%p170_p9)  ;;  %v215_v1 = vld [vmem:[%s880_s1 + $0x8] sm:$0xff] (!%p170_p9)  ;;  %vm222_vm0 = vcmask (!%p170_p9), 261120   ;;  %v687_v2 = vmov (!%p170_p9), 0.0|0.0   ;;  %vm688_vm2 = vmmov (!%p170_p9), 0   ;;  %v689_v5 = vmov (!%p170_p9), 0.0  }
   0xe   : > { %173 = sbr.rel (%p170_p9) target bundleno = 577 (0x241), region = 28  ;;  %555 = vmatprep.subr.bf16.mxu0 (!%p170_p9), %v687_v2  ;;  %v556_v3 = vpack.c.bf16 (!%p170_p9), %v215_v1, %v214_v0  ;;  %vm772_vm1 = vmpackc.low (!%p170_p9), %vm222_vm0, %vm222_vm0  ;;  %552 = vmatprep.mubr.msk.f32.mxu0 (!%p170_p9), %vm688_vm2, %v689_v5  ;;  %v216_v6 = vld [vmem:[%s880_s1 + $0x10] sm:$0xff] (!%p170_p9)  ;;  %v217_v7 = vld [vmem:[%s880_s1 + $0x18] sm:$0xff] (!%p170_p9)  ;;  %p201_p10 = scmp.lt.s32.totalorder (!%p170_p9), %s737_s19, 1  ;;  %vm320_vm3 = vcmask (!%p170_p9), 523264   ;;  %v335_v19 = vlaneseq (!%p170_p9)  ;;  %vm375_vm7 = vcmask (!%p170_p9), 516096  }
   0xf   : > { %v560_v8 = vpack.c.bf16 (!%p170_p9), %v217_v7, %v216_v6  ;;  %v218_v9 = vld [vmem:[%s880_s1 + $0x20] sm:$0xff] (!%p170_p9)  ;;  %v219_v10 = vld [vmem:[%s880_s1 + $0x28] sm:$0xff] (!%p170_p9)  ;;  %v220_v12 = vld [vmem:[%s880_s1 + $0x30] sm:$0xff] (!%p170_p9)  ;;  %s523_s5 = sshll.u32 (!%p170_p9), %s737_s19, 3  ;;  %s199_s6 = sand.u32 (!%p170_p9), 1, %s677_s16  }
  0x10   : > { %558 = vmatpush3.bf16.xpose.msk.msra.mxu0 (!%p170_p9), %vm772_vm1, %v556_v3  ;;  %v564_v11 = vpack.c.bf16 (!%p170_p9), %v219_v10, %v218_v9  ;;  %v221_v13 = vld [vmem:[%s880_s1 + $0x38] sm:$0xff] (!%p170_p9)  ;;  %v339_v20 = vshrl.u32 (!%p170_p9), %v335_v19, 7  ;;  %v340_v21 = vstv (!%p170_p9), %s523_s5  ;;  %v336_v30 = vand.u32 (!%p170_p9), 127, %v335_v19  ;;  %s524_s7 = sshll.u32 (!%p170_p9), %s737_s19, 4  ;;  %s200_s8 = scalar_lea.vmem (!%p170_p9), [#allocation2], %s199_s6 }
  0x11   : > { %559 = vmatprep.subr.bf16.mxu0 (!%p170_p9), %v687_v2  ;;  %v568_v14 = vpack.c.bf16 (!%p170_p9), %v221_v13, %v220_v12  ;;  %s404_s9 = sshll.u32 (!%p170_p9), %s200_s8, 4  ;;  %s827_s12 = scalar_lea.hbm (!%p170_p9), %s883_s4, %s524_s7  ;;  %s829_s9 = int_to_ptr.vmem [resolvable:$true] %s404_s9 }
  0x12   : > { %v341_v22 = vadd.s32 (!%p170_p9), %v340_v21, %v339_v20  ;;  %s386_s13 = scalar_lea.sflag (!%p170_p9), [#allocation3], %s199_s6  ;;  %s623_s14 = scalar_lea.vmem (!%p170_p9), %s829_s9, 16 }
  0x13   : > { %p624_p11 = scmp.ne.s32.totalorder (!%p170_p9), %s829_s9, %s623_s14 }
  0x14   : > { %v342_v26 = vmul.u32 (!%p170_p9), 4, %v341_v22 }
  0x15   : > { %s202_s23 = scalar_select %p201_p10, %s737_s19, 1 }
  0x16   : > { %v344_v31 = vadd.s32 4, %v342_v26  ;;  %vm343_vm4 = vcmp.ge.s32.totalorder %v336_v30, %v342_v26  ;;  %p625_p12 = pnand %p624_p11, %p754_p5  ;;  %s690_s19 = smov [#allocation2]  }
  0x17   : > { %s802_s27 = sshll.u32 %s202_s23, 3  ;;  %s627_s20 = sshll.u32 %s690_s19, 4  ;;  %s628_s20 = int_to_ptr.vmem [resolvable:$false] %s627_s20 }
  0x18   : > { %562 = vmatpush3.bf16.xpose.msk.msra.mxu0 %vm772_vm1, %v560_v8  ;;  %s204_s30 = scalar_lea.vmem %s879_s0, %s802_s27  ;;  %vm345_vm5 = vcmp.lt.s32.totalorder %v336_v30, %v344_v31  ;;  %p626_p13 = pneg %p625_p12 }
  0x19   : > { %563 = vmatprep.subr.bf16.mxu0 %v687_v2  ;;  %v213_v15 = vld [vmem:[%s204_s30] sm:$0xff]  ;;  %vm346_vm6 = vmand %vm343_vm4, %vm345_vm5  ;;  %s629_s22 = scalar_lea.vmem %s628_s20, 32  ;;  %p630_p0 = scmp.lt.s32.totalorder %s829_s9, %s628_s20 }
  0x1a   : > { %p631_p1 = scmp.lt.s32.totalorder %s629_s22, %s623_s14 }
  0x1c   : > { %p632_p2 = por %p631_p1, %p630_p0 }
  0x1e   : > { %p633_p3 = pnand %p632_p2, %p626_p13 }
  0x20   : > { %566 = vmatpush3.bf16.xpose.msk.msra.mxu0 %vm772_vm1, %v564_v11 }
  0x21   : > { %567 = vmatprep.subr.bf16.mxu0 %v687_v2 }
  0x28   : > { %570 = vmatpush3.bf16.xpose.msk.msra.mxu0 %vm772_vm1, %v568_v14 }
  0x2f   : > { %553 = vmatmul.mubr.msk.f32.vlgmr.msra.gmra.mrb[0].mxu0 %vm222_vm0, %v213_v15 }
 0x102   : > { %v316_v16 = vpop.f32.mrb[0].mxu0 }
 0x103   : > { %v554_v17 = vpop.f32.mrb[1].mxu0  ;;  %v321_v18 = vsel %vm320_vm3, %v316_v16, -inf }
 0x104   : > { %322 = vmax.xlane.f32.xlu0 %v321_v18 }
 0x191   : > { %v813_v23 = vpop.xlane.xlu0 %322 }
 0x192   : > { %v324_v24 = vsub.f32 %v316_v16, %v813_v23  ;;  %v355_v25 = vrot.slane %v813_v23, 4 }
 0x194   : > { %v325_v27 = vmul.f32 1.442695, %v324_v24  ;;  %v356_v28 = vmax.f32 %v813_v23, %v355_v25 }
 0x196   : > { %613 = vpow2.f32 %v325_v27  ;;  %v357_v29 = vrot.slane %v356_v28, 2 }
 0x198   : > { %v358_v32 = vmax.f32 %v356_v28, %v357_v29 }
 0x19a   : > { %v359_v33 = vrot.slane %v358_v32, 1 }
 0x19c   : > { %v360_v34 = vmax.f32 %v358_v32, %v359_v33 }
 0x19e   : > { %v361_v35 = vsub.f32 %v813_v23, %v360_v34 }
 0x1a0   : > { %v614_v36 = vpop.eup %613  ;;  %v362_v37 = vmul.f32 1.442695, %v361_v35 }
 0x1a1   : > { %v327_v38 = vsel %vm320_vm3, %v614_v36, 0.0  ;;  %v347_v39 = vsel %vm346_vm6, %v614_v36, 0.0 }
 0x1a2   : > { %328 = vadd.xlane.f32.xlu0 %v327_v38  ;;  %v348_v40 = vsel %vm320_vm3, %v347_v39, 0.0  ;;  %615 = vpow2.f32 %v362_v37 }
 0x1a3   : > { %349 = vadd.xlane.f32.xlu1 %v348_v40 }
 0x1ac   : > { %v616_v41 = vpop.eup %615 }
 0x1ad   : > { %v364_v42 = vmul.f32 %v616_v41, %v614_v36 }
 0x1af   : > { %v365_v43 = vsel %vm320_vm3, %v364_v42, 0.0 }
 0x1b0   : > { %v366_v44 = vrot.slane %v365_v43, 4 }
 0x1b2   : > { %v367_v45 = vadd.f32 %v366_v44, %v365_v43 }
 0x1b4   : > { %v368_v46 = vrot.slane %v367_v45, 2 }
 0x1b6   : > { %v369_v47 = vadd.f32 %v368_v46, %v367_v45 }
 0x1b8   : > { %v370_v48 = vrot.slane %v369_v47, 1 }
 0x1ba   : > { %v371_v49 = vadd.f32 %v370_v48, %v369_v47 }
 0x1bc   : > { %617 = vlog2.f32 %v371_v49 }
 0x1c6   : > { %v618_v50 = vpop.eup %617 }
 0x1c7   : > { %v373_v51 = vmul.f32 0.6931472, %v618_v50 }
 0x1c9   : > { %v374_v52 = vadd.f32 %v373_v51, %v360_v34 }
 0x1cb   : > { %376 = vst.msk [vmem:[%s200_s8] sm:$0x1] %vm375_vm7, %v374_v52 }
 0x1cc   : > { %636 = shalt.err (!%p633_p3)
}
 0x1cd   : > { %s637_s23 = scalar_lea.hbm %s827_s12, 16  ;;  %s641_s30 = scalar_lea.hbm %s883_s4, 32 }
 0x1ce   : > { %p638_p4 = scmp.ne.s32.totalorder %s827_s12, %s637_s23  ;;  %p642_p9 = scmp.lt.u32.totalorder %s827_s12, %s883_s4 }
 0x1cf   : > { %p643_p10 = scmp.lt.u32.totalorder %s641_s30, %s637_s23  ;;  %p645_p12 = scmp.lt.u32.totalorder %s637_s23, %s827_s12 }
 0x1d0   : > { %p639_p7 = pnand %p638_p4, %p754_p5 }
 0x1d1   : > { %p644_p11 = por %p643_p10, %p642_p9 }
 0x1d2   : > { %p640_p8 = pneg %p639_p7 }
 0x1d3   : > { %p646_p13 = por %p645_p12, %p644_p11 }
 0x1d5   : > { %p647_p0 = pnand %p646_p13, %p640_p8 }
 0x1d7   : > { %650 = shalt.err (!%p647_p0)
}
 0x1d8   : > { %571 = dma.vmem_to_hbm [thread:$0]  (%p754_p5), %s829_s9, 16, %s827_s12, %s386_s13   ;;  %vm333_vm8 = vcmask 7168  }
 0x1d9   : > { %s208_s10 = scalar_lea.vmem %s881_s2, %s802_s27  ;;  %s212_s14 = scalar_lea.vmem %s882_s3, %s802_s27 }
 0x22f   : > { %v329_v53 = vpop.xlane.xlu0 %328 }
 0x230   : > { %619 = vlog2.f32 %v329_v53  ;;  %v350_v54 = vpop.xlane.xlu1 %349 }
 0x231   : > { %621 = vlog2.f32 %v350_v54 }
 0x23a   : > { %v620_v55 = vpop.eup %619 }
 0x23b   : > { %v622_v56 = vpop.eup %621  ;;  %v331_v57 = vmul.f32 0.6931472, %v620_v55 }
 0x23c   : > { %v352_v58 = vmul.f32 0.6931472, %v622_v56 }
 0x23d   : > { %v332_v59 = vadd.f32 %v331_v57, %v813_v23 }
 0x23e   : > { %v353_v60 = vadd.f32 %v352_v58, %v813_v23 }
 0x23f   : > { %334 = vst.msk [vmem:[%s208_s10] sm:$0xff] %vm333_vm8, %v332_v59 }
 0x240   : > { %354 = vst.msk [vmem:[%s212_s14] sm:$0xff] %vm333_vm8, %v353_v60 }
 0x241 PF: > { %p577_p5 = scmp.ge.s32.totalorder %s685_s18, 2  ;;  %s430_s9 = sand.u32 1, %s673_s15  }
 0x242   : > { %s431_s12 = scalar_lea.sflag [#allocation3], %s430_s9 }
 0x243   : > { %p574_p1 = pnand %p577_p5, %p758_p6 }
 0x245   : > { %668 = dma.done.wait (!%p574_p1), %s431_s12, 16  }
 0x246   : > { %670 = vsyncadd (!%p574_p1), %s431_s12, 4294967280  ;;  %p15_p2 = scmp.ge.s32.totalorder %s741_s21, 4   ;;  %s888_s15 = smov %s677_s16 }
 0x247   : > { %s889_s16 = smov %s681_s17  ;;  %s890_s17 = smov %s752_s24 }
 0x248   : > { %s891_s18 = smov %s741_s21  ;;  %17 = sbr.rel (!%p15_p2) target bundleno = 3 (0x3), region = 87 }
 0x24f   :  { %435 = vsyncpa [#allocation3], 1 }
 0x250   :  { %437 = vsyncpa [#allocation3 + $0x1], 1 }

</bundles_post_ra>
